<compile_context>
chip_gen: v7x
topology: tpu7x:2x2x1
jax: 0.10.0
libtpu: 0.0.40
codegen_flags: <defaults>
</compile_context>

<pallas_src>
import functools

import jax
import jax.numpy as jnp
from jax.experimental import pallas as pl
from jax.experimental.pallas import tpu as pltpu

_LANE = 128
_SUBLANE = 8


def _round_up(a, b):
    return ((a + b - 1) // b) * b


def _pick_tile(total, target, unit=_LANE):
    """Largest multiple of `unit` that divides `total` and is <= max(unit, target).

    `total` must already be a multiple of `unit`.
    """
    target = max(unit, min(target, total))
    best = unit
    for d in range(unit, target + 1, unit):
        if total % d == 0:
            best = d
    return best


@functools.lru_cache(maxsize=None)
def _vmem_capacity_bytes():
    """Generation-aware VMEM capacity (128 MiB v5e/v6e, 64 MiB per-TC v7x)."""
    try:
        return int(pltpu.get_tpu_info().vmem_capacity_bytes)
    except Exception:  # pragma: no cover - conservative fallback, valid everywhere
        return 64 * 1024 * 1024


def _vmem_estimate(tm, tk, tn, dim, x_bytes, w_bytes, out_bytes, use_scratch):
    """Per-grid-step VMEM footprint (double-buffered blocks + intermediates)."""
    est = (
        2 * tm * dim * x_bytes          # x row tile
        + 2 * dim * tk * w_bytes        # w1 hidden chunk
        + 2 * _SUBLANE * tk * w_bytes   # b1 chunk (sublane-padded)
        + 2 * tk * tn * w_bytes         # w2 (hidden, out) chunk
        + 2 * _SUBLANE * tn * w_bytes   # b2 chunk
        + 2 * tm * tn * out_bytes       # output tile
        + tm * tk * 4                   # f32 GELU intermediate h
        + tm * tk * w_bytes             # h cast for the second matmul
    )
    if use_scratch:
        est += tm * tn * 4              # f32 accumulator scratch
    return est


def _mlp_kernel_accum_out(x_ref, w1_ref, b1_ref, w2_ref, b2_ref, o_ref):
    """f32 output path: accumulate directly into the VMEM-resident output block."""
    k = pl.program_id(2)

    @pl.when(k == 0)
    def _():
        # Fold the second-layer bias into the accumulator init.
        o_ref[...] = jnp.broadcast_to(b2_ref[...].astype(jnp.float32), o_ref.shape)

    # First linear chunk: MXU consumes native dtype, accumulates in f32.
    h = jnp.dot(x_ref[...], w1_ref[...], preferred_element_type=jnp.float32)
    h = h + b1_ref[...].astype(jnp.float32)
    # Exact GELU (matches torch.nn.GELU() default): 0.5 * x * (1 + erf(x / sqrt(2)))
    h = 0.5 * h * (1.0 + jax.lax.erf(h * 0.7071067811865475))
    # Second linear chunk: feed MXU in the weight dtype, accumulate in f32.
    o_ref[...] += jnp.dot(h.astype(w2_ref.dtype), w2_ref[...],
                          preferred_element_type=jnp.float32)


def _mlp_kernel_scratch(x_ref, w1_ref, b1_ref, w2_ref, b2_ref, o_ref, acc_ref):
    """Generic output dtype: f32 scratch accumulator, single cast on the last k step."""
    k = pl.program_id(2)

    @pl.when(k == 0)
    def _():
        acc_ref[...] = jnp.broadcast_to(b2_ref[...].astype(jnp.float32), acc_ref.shape)

    h = jnp.dot(x_ref[...], w1_ref[...], preferred_element_type=jnp.float32)
    h = h + b1_ref[...].astype(jnp.float32)
    h = 0.5 * h * (1.0 + jax.lax.erf(h * 0.7071067811865475))
    acc_ref[...] += jnp.dot(h.astype(w2_ref.dtype), w2_ref[...],
                            preferred_element_type=jnp.float32)

    @pl.when(k == pl.num_programs(2) - 1)
    def _():
        o_ref[...] = acc_ref[...].astype(o_ref.dtype)


def prepare_params(w1, b1, w2, b2):
    """Pad weights ONCE (call outside jit): hidden and out_dim to multiples of 128.

    Returns (w1, b1, w2, b2, out_dim) where out_dim is the true (unpadded) width.
    """
    hidden = w1.shape[1]
    out_dim = w2.shape[1]
    hidden_pad = _round_up(hidden, _LANE)
    out_pad = _round_up(out_dim, _LANE)
    if hidden_pad != hidden:
        w1 = jnp.pad(w1, ((0, 0), (0, hidden_pad - hidden)))
        b1 = jnp.pad(b1, ((0, hidden_pad - hidden),))
        w2 = jnp.pad(w2, ((0, hidden_pad - hidden), (0, 0)))
    if out_pad != out_dim:
        w2 = jnp.pad(w2, ((0, 0), (0, out_pad - out_dim)))
        b2 = jnp.pad(b2, ((0, out_pad - out_dim),))
    return w1, b1, w2, b2, out_dim


@functools.partial(jax.jit, static_argnames=("out_dim", "tile_m", "tile_k", "tile_n"))
def big_model_queen_forward(x, w1, b1, w2, b2, *, out_dim=None,
                            tile_m=512, tile_k=1024, tile_n=512):
    """x: (N, dim); w1: (dim, H); b1: (H,); w2: (H, out_cols); b2: (out_cols,).

    Weights are stored (in_features, out_features). Use prepare_params() beforehand so
    no weight-sized padding happens inside this jitted call. `out_dim` is the true
    number of output features (columns beyond it are sliced off).
    """
    N, dim = x.shape
    hidden = w1.shape[1]
    out_cols = w2.shape[1]
    if out_dim is None:
        out_dim = out_cols

    # Lane-align hidden / output columns (no-op when prepare_params was used).
    hidden_pad = _round_up(hidden, _LANE)
    out_pad = _round_up(out_cols, _LANE)
    if hidden_pad != hidden:
        w1 = jnp.pad(w1, ((0, 0), (0, hidden_pad - hidden)))
        b1 = jnp.pad(b1, ((0, hidden_pad - hidden),))
        w2 = jnp.pad(w2, ((0, hidden_pad - hidden), (0, 0)))
    if out_pad != out_cols:
        w2 = jnp.pad(w2, ((0, 0), (0, out_pad - out_cols)))
        b2 = jnp.pad(b2, ((0, out_pad - out_cols),))

    out_dtype = x.dtype
    accumulate_in_out = (jnp.dtype(out_dtype) == jnp.dtype(jnp.float32))

    # ---- static tile selection, shrunk-to-fit against the per-generation VMEM cap ----
    tm = max(_SUBLANE, min(tile_m, _round_up(N, _SUBLANE)))
    tm = max(_SUBLANE, (tm // _SUBLANE) * _SUBLANE)
    tk = _pick_tile(hidden_pad, tile_k)
    tn = _pick_tile(out_pad, tile_n)

    budget = _vmem_capacity_bytes()
    x_bytes = x.dtype.itemsize
    w_bytes = w1.dtype.itemsize
    o_bytes = jnp.dtype(out_dtype).itemsize
    while True:
        need = int(1.25 * _vmem_estimate(tm, tk, tn, dim, x_bytes, w_bytes, o_bytes,
                                         not accumulate_in_out)) + (4 << 20)
        if need <= budget:
            break
        if tk > _LANE:
            tk = _pick_tile(hidden_pad, tk // 2)
        elif tn > _LANE:
            tn = _pick_tile(out_pad, tn // 2)
        elif tm > 64:
            tm = max(64, (tm // 2 // _SUBLANE) * _SUBLANE)
        else:
            break
    vmem_limit = int(min(budget, max(need, 32 * 1024 * 1024)))

    n_pad = _round_up(N, tm)
    if n_pad != N:
        x = jnp.pad(x, ((0, n_pad - N), (0, 0)))

    b1_2d = b1.reshape(1, hidden_pad)
    b2_2d = b2.reshape(1, out_pad)

    grid = (n_pad // tm, out_pad // tn, hidden_pad // tk)
    col_tiles = out_pad // tn
    row_tiles = n_pad // tm

    # Advisory cost for XLA's scheduler (includes w1 re-stream across column tiles).
    flops = 2 * n_pad * dim * hidden_pad * col_tiles + 2 * n_pad * hidden_pad * out_pad
    bytes_accessed = (
        n_pad * dim * x_bytes * col_tiles
        + dim * hidden_pad * w_bytes * row_tiles * col_tiles
        + hidden_pad * w_bytes * row_tiles * col_tiles
        + hidden_pad * out_pad * w_bytes * row_tiles
        + out_pad * w_bytes * row_tiles
        + n_pad * out_pad * o_bytes
    )
    cost = pl.CostEstimate(flops=flops,
                           transcendentals=n_pad * hidden_pad * col_tiles,
                           bytes_accessed=bytes_accessed)

    in_specs = [
        pl.BlockSpec((tm, dim), lambda i, j, k: (i, 0)),   # x row tile (resident over j,k)
        pl.BlockSpec((dim, tk), lambda i, j, k: (0, k)),   # w1 hidden chunk (streamed)
        pl.BlockSpec((1, tk), lambda i, j, k: (0, k)),     # b1 hidden chunk
        pl.BlockSpec((tk, tn), lambda i, j, k: (k, j)),    # w2 (hidden, out) chunk
        pl.BlockSpec((1, tn), lambda i, j, k: (0, j)),     # b2 out chunk
    ]
    out_spec = pl.BlockSpec((tm, tn), lambda i, j, k: (i, j))

    kernel = _mlp_kernel_accum_out if accumulate_in_out else _mlp_kernel_scratch
    scratch = [] if accumulate_in_out else [pltpu.VMEM((tm, tn), jnp.float32)]

    out = pl.pallas_call(
        kernel,
        out_shape=jax.ShapeDtypeStruct((n_pad, out_pad), out_dtype),
        grid_spec=pltpu.PrefetchScalarGridSpec(
            num_scalar_prefetch=0,
            grid=grid,
            in_specs=in_specs,
            out_specs=out_spec,
            scratch_shapes=scratch,
        ),
        compiler_params=pltpu.CompilerParams(
            dimension_semantics=("parallel", "parallel", "arbitrary"),
            vmem_limit_bytes=vmem_limit,
        ),
        cost_estimate=cost,
    )(x, w1, b1_2d, w2, b2_2d)

    return out[:N, :out_dim]


def init_params(key, dim, out_dim, dtype=jnp.float32):
    """nn.Linear-style init (uniform +/- 1/sqrt(fan_in)), (in, out) weight layout."""
    hidden = dim * 4
    k1, k2, k3, k4 = jax.random.split(key, 4)
    lim1 = 1.0 / float(dim) ** 0.5
    lim2 = 1.0 / float(hidden) ** 0.5
    w1 = jax.random.uniform(k1, (dim, hidden), dtype, -lim1, lim1)
    b1 = jax.random.uniform(k2, (hidden,), dtype, -lim1, lim1)
    w2 = jax.random.uniform(k3, (hidden, out_dim), dtype, -lim2, lim2)
    b2 = jax.random.uniform(k4, (out_dim,), dtype, -lim2, lim2)
    return w1, b1, w2, b2


def _reference(x, w1, b1, w2, b2):
    h = x.astype(jnp.float32) @ w1.astype(jnp.float32) + b1.astype(jnp.float32)
    h = 0.5 * h * (1.0 + jax.lax.erf(h / jnp.sqrt(2.0)))
    return (h @ w2.astype(jnp.float32) + b2.astype(jnp.float32)).astype(x.dtype)


if __name__ == "__main__":
    key = jax.random.PRNGKey(0)

    # Case 1: module-consistent toy shapes: dim=32 -> hidden=128;
    # task='classification' with max_feat=16 -> out_dim=16; batch of 8.
    dim, out_dim, N = 32, 16, 8
    kx, kp, key = jax.random.split(key, 3)
    x = jax.random.normal(kx, (N, dim), jnp.float32)
    params = init_params(kp, dim, out_dim, jnp.float32)
    pw1, pb1, pw2, pb2, od = prepare_params(*params)

    y = big_model_queen_forward(x, pw1, pb1, pw2, pb2, out_dim=od)
    jax.block_until_ready(y)
    y_ref = _reference(x, *params)
    assert y.shape == (N, out_dim)
    assert jnp.allclose(y, y_ref, atol=1e-4, rtol=1e-4), "mismatch vs reference (case 1)"

    # Case 2: exercise row tiling, hidden streaming (4 k-steps) and ragged-N padding.
    dim2, out_dim2, N2 = 256, 16, 300
    kx2, kp2, key = jax.random.split(key, 3)
    x2 = jax.random.normal(kx2, (N2, dim2), jnp.float32)
    params2 = init_params(kp2, dim2, out_dim2, jnp.float32)
    pw1b, pb1b, pw2b, pb2b, od2 = prepare_params(*params2)

    y2 = big_model_queen_forward(x2, pw1b, pb1b, pw2b, pb2b,
                                 out_dim=od2, tile_m=256, tile_k=256)
    jax.block_until_ready(y2)
    y2_ref = _reference(x2, *params2)
    assert y2.shape == (N2, out_dim2)
    assert jnp.allclose(y2, y2_ref, atol=1e-4, rtol=1e-4), "mismatch vs reference (case 2)"

    # Case 3: bf16 path (f32 scratch-accumulator kernel variant), loose tolerance.
    dim3, out_dim3, N3 = 128, 16, 64
    kx3, kp3, key = jax.random.split(key, 3)
    x3 = jax.random.normal(kx3, (N3, dim3), jnp.bfloat16)
    params3 = init_params(kp3, dim3, out_dim3, jnp.bfloat16)
    pw1c, pb1c, pw2c, pb2c, od3 = prepare_params(*params3)

    y3 = big_model_queen_forward(x3, pw1c, pb1c, pw2c, pb2c, out_dim=od3, tile_k=256)
    jax.block_until_ready(y3)
    y3_ref = _reference(x3, *params3)
    assert y3.shape == (N3, out_dim3)
    assert jnp.allclose(y3.astype(jnp.float32), y3_ref.astype(jnp.float32),
                        atol=1e-1, rtol=1e-1), "mismatch vs reference (case 3)"

    print("KERNEL_OK")
</pallas_src>

<mosaic_0001>
module attributes {stable_mosaic.version = 11 : i64} {
  func.func @_mlp_kernel_accum_out(%arg0: i32, %arg1: i32, %arg2: i32, %arg3: memref<8x32xf32, #tpu.memory_space<vmem>>, %arg4: memref<32x128xf32, #tpu.memory_space<vmem>>, %arg5: memref<1x128xf32, #tpu.memory_space<vmem>>, %arg6: memref<128x128xf32, #tpu.memory_space<vmem>>, %arg7: memref<1x128xf32, #tpu.memory_space<vmem>>, %arg8: memref<8x128xf32, #tpu.memory_space<vmem>>) attributes {dimension_semantics = [#tpu.dimension_semantics<parallel>, #tpu.dimension_semantics<parallel>, #tpu.dimension_semantics<arbitrary>], iteration_bounds = array<i64: 1, 1, 1>, scalar_prefetch = 0 : i64, scratch_operands = 0 : i64, tpu.core_type = #tpu.core_type<tc>, window_params = [{transform_indices = @transform_0, window_bounds = array<i64: 8, 32>}, {transform_indices = @transform_1, window_bounds = array<i64: 32, 128>}, {transform_indices = @transform_2, window_bounds = array<i64: 1, 128>}, {transform_indices = @transform_3, window_bounds = array<i64: 128, 128>}, {transform_indices = @transform_4, window_bounds = array<i64: 1, 128>}, {transform_indices = @transform_5, window_bounds = array<i64: 8, 128>}]} {
    %c0_i32 = arith.constant 0 : i32
    %0 = arith.cmpi eq, %arg2, %c0_i32 : i32
    %1 = arith.extui %0 : i1 to i32
    %c0_i32_0 = arith.constant 0 : i32
    %2 = arith.cmpi ne, %1, %c0_i32_0 : i32
    scf.if %2 {
      %c0_16 = arith.constant 0 : index
      %c0_17 = arith.constant 0 : index
      %22 = vector.load %arg7[%c0_16, %c0_17] : memref<1x128xf32, #tpu.memory_space<vmem>>, vector<1x128xf32>
      %23 = vector.shape_cast %22 : vector<1x128xf32> to vector<1x128xf32>
      %24 = vector.broadcast %23 : vector<1x128xf32> to vector<8x128xf32>
      %c0_18 = arith.constant 0 : index
      %c0_19 = arith.constant 0 : index
      %25 = vector.load %arg8[%c0_18, %c0_19] : memref<8x128xf32, #tpu.memory_space<vmem>>, vector<8x128xf32>
      tpu.vector_store %arg8[%c0_18, %c0_19], %24 {strides = array<i32>} : memref<8x128xf32, #tpu.memory_space<vmem>>, vector<8x128xf32>,
    } else {
    }
    %c0 = arith.constant 0 : index
    %c0_1 = arith.constant 0 : index
    %3 = vector.load %arg3[%c0, %c0_1] : memref<8x32xf32, #tpu.memory_space<vmem>>, vector<8x32xf32>
    %c0_2 = arith.constant 0 : index
    %c0_3 = arith.constant 0 : index
    %4 = vector.load %arg4[%c0_2, %c0_3] : memref<32x128xf32, #tpu.memory_space<vmem>>, vector<32x128xf32>
    %cst = arith.constant dense<0.000000e+00> : vector<8x128xf32>
    %5 = tpu.matmul %3, %4, %cst {dimension_numbers = #tpu.dot_dimension_numbers<[1], [0], [0], [1], [0, 0, 1, 1], [], []>} : vector<8x32xf32>, vector<32x128xf32>, vector<8x128xf32> -> vector<8x128xf32>
    %c0_4 = arith.constant 0 : index
    %c0_5 = arith.constant 0 : index
    %6 = vector.load %arg5[%c0_4, %c0_5] : memref<1x128xf32, #tpu.memory_space<vmem>>, vector<1x128xf32>
    %7 = vector.broadcast %6 : vector<1x128xf32> to vector<8x128xf32>
    %8 = arith.addf %5, %7 : vector<8x128xf32>
    %cst_6 = arith.constant 5.000000e-01 : f32
    %9 = vector.broadcast %cst_6 : f32 to vector<8x128xf32>
    %10 = arith.mulf %9, %8 : vector<8x128xf32>
    %cst_7 = arith.constant 0.707106769 : f32
    %11 = vector.broadcast %cst_7 : f32 to vector<8x128xf32>
    %12 = arith.mulf %8, %11 : vector<8x128xf32>
    %13 = math.erf %12 : vector<8x128xf32>
    %cst_8 = arith.constant 1.000000e+00 : f32
    %14 = vector.broadcast %cst_8 : f32 to vector<8x128xf32>
    %15 = arith.addf %14, %13 : vector<8x128xf32>
    %16 = arith.mulf %10, %15 : vector<8x128xf32>
    %c0_9 = arith.constant 0 : index
    %c0_10 = arith.constant 0 : index
    %17 = vector.load %arg8[%c0_9, %c0_10] : memref<8x128xf32, #tpu.memory_space<vmem>>, vector<8x128xf32>
    %c0_11 = arith.constant 0 : index
    %c0_12 = arith.constant 0 : index
    %18 = vector.load %arg6[%c0_11, %c0_12] : memref<128x128xf32, #tpu.memory_space<vmem>>, vector<128x128xf32>
    %cst_13 = arith.constant dense<0.000000e+00> : vector<8x128xf32>
    %19 = tpu.matmul %16, %18, %cst_13 {dimension_numbers = #tpu.dot_dimension_numbers<[1], [0], [0], [1], [0, 0, 1, 1], [], []>} : vector<8x128xf32>, vector<128x128xf32>, vector<8x128xf32> -> vector<8x128xf32>
    %20 = arith.addf %17, %19 : vector<8x128xf32>
    %c0_14 = arith.constant 0 : index
    %c0_15 = arith.constant 0 : index
    %21 = vector.load %arg8[%c0_14, %c0_15] : memref<8x128xf32, #tpu.memory_space<vmem>>, vector<8x128xf32>
    tpu.vector_store %arg8[%c0_14, %c0_15], %20 {strides = array<i32>} : memref<8x128xf32, #tpu.memory_space<vmem>>, vector<8x128xf32>,
    return
  }
  func.func @transform_0(%arg0: i32, %arg1: i32, %arg2: i32) -> (i32, i32) {
    %c0_i32 = arith.constant 0 : i32
    %c0_i32_0 = arith.constant 0 : i32
    return %arg0, %c0_i32 : i32, i32
  }
  func.func @transform_1(%arg0: i32, %arg1: i32, %arg2: i32) -> (i32, i32) {
    %c0_i32 = arith.constant 0 : i32
    %c0_i32_0 = arith.constant 0 : i32
    return %c0_i32, %arg2 : i32, i32
  }
  func.func @transform_2(%arg0: i32, %arg1: i32, %arg2: i32) -> (i32, i32) {
    %c0_i32 = arith.constant 0 : i32
    %c0_i32_0 = arith.constant 0 : i32
    return %c0_i32, %arg2 : i32, i32
  }
  func.func @transform_3(%arg0: i32, %arg1: i32, %arg2: i32) -> (i32, i32) {
    %c0_i32 = arith.constant 0 : i32
    return %arg2, %arg1 : i32, i32
  }
  func.func @transform_4(%arg0: i32, %arg1: i32, %arg2: i32) -> (i32, i32) {
    %c0_i32 = arith.constant 0 : i32
    %c0_i32_0 = arith.constant 0 : i32
    return %c0_i32, %arg1 : i32, i32
  }
  func.func @transform_5(%arg0: i32, %arg1: i32, %arg2: i32) -> (i32, i32) {
    %c0_i32 = arith.constant 0 : i32
    return %arg0, %arg1 : i32, i32
  }
}

</mosaic_0001>

<bundles_post_ra>
// kernel: big_model_queen_forward.1
= control target key start
LH: loop header
LB: loop body
LE: loop exit
PB: predicated region body
PF: predicated region fallthrough
CT: control target
= control target key end

     0   :  { %10 = vsyncpa [#allocation3], 0  ;;  %s573_s0 = inlined_call_operand.hbm [shape: f32[8,32], index: 0, kind: input, shape index: {}]   ;;  %s574_s1 = inlined_call_operand.hbm [shape: f32[32,128], index: 1, kind: input, shape index: {}]   ;;  %s575_s2 = inlined_call_operand.vmem [shape: f32[1,128], index: 2, kind: input, shape index: {}]   ;;  %s576_s3 = inlined_call_operand.hbm [shape: f32[128,128], index: 3, kind: input, shape index: {}]   ;;  %s577_s4 = inlined_call_operand.vmem [shape: f32[1,128], index: 4, kind: input, shape index: {}]   ;;  %s578_s5 = inlined_call_operand.hbm [shape: f32[8,128], index: 5, kind: output, shape index: {}]  }
   0x1   :  { %11 = vsyncpa [#allocation6], 0 }
   0x2   :  { %12 = vsyncpa [#allocation4], 0  ;;  %s474_s18 = smov [#allocation5]   ;;  %s380_s22 = scalar_lea.hbm %s574_s1, 512 }
   0x3   :  { %s28_s19 = sshll.u32 %s474_s18, 4  ;;  %p381_p0 = scmp.ne.s32.totalorder %s574_s1, %s380_s22  ;;  %s29_s19 = int_to_ptr.vmem [resolvable:$true] %s28_s19 }
   0x4   :  { %p384_p1 = scmp.lt.u32.totalorder %s380_s22, %s574_s1 }
   0x6   :  { %p386_p2 = pnand %p384_p1, %p381_p0 }
   0x8   :  { %389 = shalt.err (!%p386_p2)
}
   0x9   :  { %s390_s27 = scalar_lea.vmem %s29_s19, 512  ;;  %p395_p4 = scmp.lt.s32.totalorder %s29_s19, %s29_s19 }
   0xa   :  { %p391_p3 = scmp.ne.s32.totalorder %s29_s19, %s390_s27  ;;  %p396_p5 = scmp.lt.s32.totalorder %s390_s27, %s390_s27 }
   0xc   :  { %p397_p6 = por %p396_p5, %p395_p4 }
   0xe   :  { %p398_p7 = pnand %p397_p6, %p391_p3 }
  0x10   :  { %401 = shalt.err (!%p398_p7)
}
  0x11   :  { %s475_s28 = smov 128   ;;  %s476_s29 = smov 8  }
  0x12   :  { %34 = dma.hbm_to_vmem [thread:$0]  %s574_s1, 512, %s29_s19, [#allocation6], %s475_s28, %s475_s28, %s476_s29  }
  0x13   :  { %s477_s7 = smov [#allocation2]   ;;  %s478_s9 = smov [#allocation7]  }
  0x14   :  { %s19_s8 = sshll.u32 %s477_s7, 4  ;;  %s42_s10 = sshll.u32 %s478_s9, 4  ;;  %s20_s8 = int_to_ptr.vmem [resolvable:$true] %s19_s8  ;;  %s43_s10 = int_to_ptr.vmem [resolvable:$true] %s42_s10 }
  0x15   :  { %s402_s13 = scalar_lea.hbm %s573_s0, 128 }
  0x16   :  { %p403_p8 = scmp.ne.s32.totalorder %s573_s0, %s402_s13  ;;  %p406_p9 = scmp.lt.u32.totalorder %s402_s13, %s573_s0 }
  0x18   :  { %p408_p10 = pnand %p406_p9, %p403_p8 }
  0x1a   :  { %411 = shalt.err (!%p408_p10)
}
  0x1b   :  { %s412_s1 = scalar_lea.vmem %s20_s8, 128  ;;  %p417_p12 = scmp.lt.s32.totalorder %s20_s8, %s20_s8 }
  0x1c   :  { %p413_p11 = scmp.ne.s32.totalorder %s20_s8, %s412_s1  ;;  %p418_p13 = scmp.lt.s32.totalorder %s412_s1, %s412_s1 }
  0x1e   :  { %p419_p0 = por %p418_p13, %p417_p12 }
  0x20   :  { %p420_p1 = pnand %p419_p0, %p413_p11 }
  0x22   :  { %423 = shalt.err (!%p420_p1)
}
  0x23   :  { %22 = dma.hbm_to_vmem [thread:$0]  %s573_s0, 128, %s20_s8, [#allocation3]  }
  0x24   :  { %s424_s22 = scalar_lea.hbm %s576_s3, 2048 }
  0x25   :  { %p425_p2 = scmp.ne.s32.totalorder %s576_s3, %s424_s22  ;;  %p428_p3 = scmp.lt.u32.totalorder %s424_s22, %s576_s3 }
  0x27   :  { %p430_p4 = pnand %p428_p3, %p425_p2 }
  0x29   :  { %433 = shalt.err (!%p430_p4)
}
  0x2a   :  { %s434_s27 = scalar_lea.vmem %s43_s10, 2048  ;;  %p439_p6 = scmp.lt.s32.totalorder %s43_s10, %s43_s10 }
  0x2b   :  { %p435_p5 = scmp.ne.s32.totalorder %s43_s10, %s434_s27  ;;  %p440_p7 = scmp.lt.s32.totalorder %s434_s27, %s434_s27 }
  0x2d   :  { %p441_p8 = por %p440_p7, %p439_p6 }
  0x2f   :  { %p442_p9 = pnand %p441_p8, %p435_p5 }
  0x31   :  { %445 = shalt.err (!%p442_p9)
}
  0x32   :  { %48 = dma.hbm_to_vmem [thread:$0]  %s576_s3, 2048, %s43_s10, [#allocation6], %s475_s28, %s475_s28, %s476_s29  }
  0x33   :  { %468 = dma.done.wait [#allocation3], 128  }
  0x34   :  { %469 = vsyncadd [#allocation3], 4294967168 }
  0x35   :  { %470 = dma.done.wait [#allocation6], 2560  }
  0x36   :  { %471 = vsyncadd [#allocation6], 4294964736  ;;  %v479_v0 = vmov 0.0|0.0   ;;  %vm480_vm0 = vmmov 0   ;;  %v481_v1 = vmov 0.0   ;;  %v73_v2 = vld [vmem:[#allocation5] sm:$0xff] }
  0x37   :  { %339 = vmatprep.subr.bf16.mxu0 %v479_v0  ;;  %301 = vmatprep.mubr.msk.f32.mxu0 %vm480_vm0, %v481_v1  ;;  %v74_v3 = vld [vmem:[#allocation5 + $0x8] sm:$0xff]  ;;  %v75_v4 = vld [vmem:[#allocation5 + $0x10] sm:$0xff]  ;;  %v76_v6 = vld [vmem:[#allocation5 + $0x18] sm:$0xff]  ;;  %vm84_vm1 = vcmask 261120   ;;  %s482_s7 = smov [#allocation8]  }
  0x38   :  { %345 = vmatprep.subr.bf16.mxu1 %v479_v0  ;;  %336 = vmatprep.mubr.msk.f32.mxu1 %vm480_vm0, %v481_v1  ;;  %v340_v5 = vpack.c.bf16 %v74_v3, %v73_v2  ;;  %v164_v7 = vld [vmem:[#allocation7] sm:$0xff]  ;;  %v165_v8 = vld [vmem:[#allocation7 + $0x8] sm:$0xff]  ;;  %v166_v9 = vld [vmem:[#allocation7 + $0x10] sm:$0xff]  ;;  %v343_v11 = vpack.c.bf16 %v76_v6, %v75_v4  ;;  %s258_s8 = sshll.u32 %s482_s7, 4  ;;  %s259_s8 = int_to_ptr.vmem [resolvable:$true] %s258_s8 }
  0x39   :  { %v167_v10 = vld [vmem:[#allocation7 + $0x18] sm:$0xff]  ;;  %v346_v12 = vpack.c.bf16 %v165_v8, %v164_v7  ;;  %v168_v14 = vld [vmem:[#allocation7 + $0x20] sm:$0xff]  ;;  %v169_v15 = vld [vmem:[#allocation7 + $0x28] sm:$0xff]  ;;  %p451_p11 = scmp.lt.s32.totalorder %s259_s8, %s259_s8 }
  0x3a   :  { %341 = vmatpush3.bf16.msra.mxu0 %v340_v5  ;;  %v349_v13 = vpack.c.bf16 %v167_v10, %v166_v9  ;;  %v72_v16 = vld [vmem:[#allocation2] sm:$0xff]  ;;  %v352_v17 = vpack.c.bf16 %v169_v15, %v168_v14  ;;  %v170_v18 = vld [vmem:[#allocation7 + $0x30] sm:$0xff]  ;;  %v172_v21 = vld [vmem:[#allocation7 + $0x40] sm:$0xff] }
  0x3b   :  { %342 = vmatprep.subr.bf16.mxu0 %v479_v0  ;;  %347 = vmatpush3.bf16.msra.mxu1 %v346_v12  ;;  %v171_v19 = vld [vmem:[#allocation7 + $0x38] sm:$0xff]  ;;  %v173_v22 = vld [vmem:[#allocation7 + $0x48] sm:$0xff]  ;;  %v174_v24 = vld [vmem:[#allocation7 + $0x50] sm:$0xff] }
  0x3c   :  { %348 = vmatprep.subr.bf16.mxu1 %v479_v0  ;;  %v355_v20 = vpack.c.bf16 %v171_v19, %v170_v18  ;;  %v358_v23 = vpack.c.bf16 %v173_v22, %v172_v21  ;;  %v175_v25 = vld [vmem:[#allocation7 + $0x58] sm:$0xff]  ;;  %v176_v27 = vld [vmem:[#allocation7 + $0x60] sm:$0xff]  ;;  %v177_v28 = vld [vmem:[#allocation7 + $0x68] sm:$0xff] }
  0x3d   :  { %v361_v26 = vpack.c.bf16 %v175_v25, %v174_v24  ;;  %v364_v29 = vpack.c.bf16 %v177_v28, %v176_v27  ;;  %v178_v30 = vld [vmem:[#allocation7 + $0x70] sm:$0xff]  ;;  %v179_v31 = vld [vmem:[#allocation7 + $0x78] sm:$0xff] }
  0x3e   :  { %344 = vmatpush3.bf16.msra.mxu0 %v343_v11  ;;  %v367_v32 = vpack.c.bf16 %v179_v31, %v178_v30  ;;  %v269_v33 = vld [vmem:[%s575_s2] ss:$0 sm:$0xff]  ;;  %s446_s2 = scalar_lea.vmem %s259_s8, 128 }
  0x3f   :  { %350 = vmatpush3.bf16.msra.mxu1 %v349_v13  ;;  %v268_v42 = vld [vmem:[%s577_s4] ss:$0 sm:$0xff]  ;;  %p447_p10 = scmp.ne.s32.totalorder %s259_s8, %s446_s2  ;;  %p452_p12 = scmp.lt.s32.totalorder %s446_s2, %s446_s2 }
  0x40   :  { %351 = vmatprep.subr.bf16.mxu1 %v479_v0 }
  0x41   :  { %302 = vmatmul.mubr.msk.f32.vlgmr.msra.gmra.mrb[0].mxu0 %vm84_vm1, %v72_v16  ;;  %p453_p13 = por %p452_p12, %p451_p11 }
  0x43   :  { %353 = vmatpush3.bf16.msra.mxu1 %v352_v17  ;;  %p454_p0 = pnand %p453_p13, %p447_p10 }
  0x44   :  { %354 = vmatprep.subr.bf16.mxu1 %v479_v0 }
  0x47   :  { %356 = vmatpush3.bf16.msra.mxu1 %v355_v20 }
  0x48   :  { %357 = vmatprep.subr.bf16.mxu1 %v479_v0 }
  0x4b   :  { %359 = vmatpush3.bf16.msra.mxu1 %v358_v23 }
  0x4c   :  { %360 = vmatprep.subr.bf16.mxu1 %v479_v0 }
  0x4f   :  { %362 = vmatpush3.bf16.msra.mxu1 %v361_v26 }
  0x50   :  { %363 = vmatprep.subr.bf16.mxu1 %v479_v0 }
  0x53   :  { %365 = vmatpush3.bf16.msra.mxu1 %v364_v29 }
  0x54   :  { %366 = vmatprep.subr.bf16.mxu1 %v479_v0 }
  0x57   :  { %368 = vmatpush3.bf16.msra.mxu1 %v367_v32 }
 0x114   :  { %v154_v34 = vpop.f32.mrb[0].mxu0 }
 0x115   :  { %v155_v35 = vadd.f32 %v269_v33, %v154_v34  ;;  %v303_v36 = vpop.f32.mrb[1].mxu0 }
 0x117   :  { %v159_v37 = vmul.f32 0.70710677, %v155_v35  ;;  %v158_v39 = vmul.f32 0.5, %v155_v35 }
 0x119   :  { %378 = verf.f32 %v159_v37 }
 0x123   :  { %v379_v38 = vpop.eup %378 }
 0x124   :  { %v161_v40 = vadd.f32 1.0, %v379_v38 }
 0x126   :  { %v162_v41 = vmul.f32 %v161_v40, %v158_v39 }
 0x128   :  { %337 = vmatmul.mubr.f32.vlgmr.msra.gmra.mrb[0].mxu1 %v162_v41 }
 0x1fb   :  { %v246_v43 = vpop.f32.mrb[0].mxu1 }
 0x1fc   :  { %v250_v44 = vadd.f32 %v268_v42, %v246_v43  ;;  %v338_v45 = vpop.f32.mrb[1].mxu1 }
 0x1fe   :  { %251 = vst [vmem:[#allocation8] sm:$0xff] %v250_v44 }
 0x1ff   :  { %457 = shalt.err (!%p454_p0)
}
 0x200   :  { %s458_s11 = scalar_lea.hbm %s578_s5, 128 }
 0x201   :  { %p459_p1 = scmp.ne.s32.totalorder %s578_s5, %s458_s11  ;;  %p462_p2 = scmp.lt.u32.totalorder %s458_s11, %s578_s5 }
 0x203   :  { %p464_p3 = pnand %p462_p2, %p459_p1 }
 0x205   :  { %467 = shalt.err (!%p464_p3)
}
 0x206   :  { %261 = dma.vmem_to_hbm [thread:$0]  %s259_s8, 128, %s578_s5, [#allocation4]  }
 0x207   :  { %472 = dma.done.wait [#allocation4], 128  }
 0x208   :  { %473 = vsyncadd [#allocation4], 4294967168 }
 0x209   :  { %265 = vsyncpa [#allocation3], 1 }
 0x20a   :  { %266 = vsyncpa [#allocation6], 1 }
 0x20b   :  { %267 = vsyncpa [#allocation4], 1 }

</bundles_post_ra>
